<compile_context>
chip_gen: v5e
topology: v5e:2x2
jax: 0.10.0
libtpu: 0.0.40
codegen_flags: <defaults>
</compile_context>

<pallas_src>
import jax
import jax.numpy as jnp
from jax.experimental import pallas as pl
from jax.experimental.pallas import tpu as pltpu

LANE = 128
ROW_ALIGN = 16  # row granularity safe for both f32 (8-sublane) and bf16 (16-sublane) tiles


def _round_up(n: int, m: int) -> int:
    return ((n + m - 1) // m) * m


def mlp_kernel(x_ref, w1_ref, b1_ref, w2_ref, b2_ref, w3_ref, b3_ref, o_ref):
    """One batch tile of the fused MLP forward.

    Layer 1: Linear(in -> h1) + ReLU
    Layer 2: Linear(h1 -> h2) + ReLU
    Layer 3: Linear(h2 -> out)            (no activation, matches the PyTorch module)

    x / weights are bf16, all dots accumulate in f32 on the MXU, biases are f32,
    hidden activations are re-cast to bf16 before the next dot.  Padded hidden lanes
    carry exact zeros (zero weight column + zero bias, ReLU(0)=0), so results are
    identical to the unpadded math.
    """
    x = x_ref[...]
    h1 = jnp.dot(x, w1_ref[...], preferred_element_type=jnp.float32) + b1_ref[...]
    h1 = jnp.maximum(h1, 0.0).astype(x.dtype)
    h2 = jnp.dot(h1, w2_ref[...], preferred_element_type=jnp.float32) + b2_ref[...]
    h2 = jnp.maximum(h2, 0.0).astype(x.dtype)
    out = jnp.dot(h2, w3_ref[...], preferred_element_type=jnp.float32) + b3_ref[...]
    o_ref[...] = out.astype(o_ref.dtype)


def prepare_params(params, compute_dtype=jnp.bfloat16):
    """Pad hidden dims to lane multiples and cast weights to bf16 ONCE (outside the hot path).

    params = ((w1, b1), (w2, b2), (w3, b3)); w_i is (in, out), b_i is (1, out).
    The output feature dim (28) is intentionally NOT padded, so the kernel's output
    store path writes only the real 28 columns.
    """
    (w1, b1), (w2, b2), (w3, b3) = params
    h1_dim, h2_dim = w1.shape[1], w2.shape[1]
    h1_p = _round_up(h1_dim, LANE)   # 150 -> 256
    h2_p = _round_up(h2_dim, LANE)   # 80  -> 128

    w1p = jnp.pad(w1, ((0, 0), (0, h1_p - h1_dim))).astype(compute_dtype)
    b1p = jnp.pad(b1, ((0, 0), (0, h1_p - h1_dim))).astype(jnp.float32)
    w2p = jnp.pad(w2, ((0, h1_p - h1_dim), (0, h2_p - h2_dim))).astype(compute_dtype)
    b2p = jnp.pad(b2, ((0, 0), (0, h2_p - h2_dim))).astype(jnp.float32)
    w3p = jnp.pad(w3, ((0, h2_p - h2_dim), (0, 0))).astype(compute_dtype)
    b3p = b3.astype(jnp.float32)
    return (w1p, b1p, w2p, b2p, w3p, b3p)


def fully_connected_forward(x, prepared, *, tile_b: int = 8192,
                            vmem_limit_bytes: int = 48 << 20):
    """x: (batch, in_dim) array (any float dtype); prepared = prepare_params(params)."""
    w1p, b1p, w2p, b2p, w3p, b3p = prepared
    batch, in_dim = x.shape
    h1_p, h2_p, out_dim = w1p.shape[1], w2p.shape[1], w3p.shape[1]
    compute_dtype = w1p.dtype

    # bf16 input stream (no-op if the caller already supplies bf16).
    x = x.astype(compute_dtype)

    # ---- Batch tile sizing (no padding/copy of x; trailing partial block is masked). ----
    tile_b = max(ROW_ALIGN, min(tile_b, _round_up(batch, ROW_ALIGN)))
    # Ensure >=2 grid steps when the batch allows it, so both v7x TensorCores get work.
    if batch > ROW_ALIGN and pl.cdiv(batch, tile_b) < 2:
        tile_b = max(ROW_ALIGN, _round_up(pl.cdiv(batch, 2), ROW_ALIGN))
    grid = (pl.cdiv(batch, tile_b),)

    # Advisory cost estimate (bf16 x / weights streamed once, narrow f32 output).
    h1_dim, h2_dim = 150, 80  # logical (unpadded) dims only affect the flop count hint
    flops = 2 * batch * (in_dim * h1_p + h1_p * h2_p + h2_p * out_dim)
    weight_bytes = 2 * (w1p.size + w2p.size + w3p.size) + 4 * (b1p.size + b2p.size + b3p.size)
    bytes_accessed = 2 * batch * in_dim + 4 * batch * out_dim + weight_bytes

    out = pl.pallas_call(
        mlp_kernel,
        out_shape=jax.ShapeDtypeStruct((batch, out_dim), jnp.float32),
        grid=grid,
        in_specs=[
            # Streamed batch tile of activations.
            pl.BlockSpec((tile_b, in_dim), lambda i: (i, 0)),
            # Weights / biases: constant index_map -> resident in VMEM across the grid.
            pl.BlockSpec((in_dim, h1_p), lambda i: (0, 0)),
            pl.BlockSpec((1, h1_p), lambda i: (0, 0)),
            pl.BlockSpec((h1_p, h2_p), lambda i: (0, 0)),
            pl.BlockSpec((1, h2_p), lambda i: (0, 0)),
            pl.BlockSpec((h2_p, out_dim), lambda i: (0, 0)),
            pl.BlockSpec((1, out_dim), lambda i: (0, 0)),
        ],
        # Output block keeps the full (unpadded) 28-column last dim -> lane-masked but
        # minimal-byte stores; no follow-up slice pass in the wrapper.
        out_specs=pl.BlockSpec((tile_b, out_dim), lambda i: (i, 0)),
        compiler_params=pltpu.CompilerParams(
            dimension_semantics=("parallel",),   # batch tiles split across TCs on v7x
            vmem_limit_bytes=vmem_limit_bytes,
        ),
        cost_estimate=pl.CostEstimate(
            flops=flops, transcendentals=0, bytes_accessed=bytes_accessed),
    )(x, w1p, b1p, w2p, b2p, w3p, b3p)
    return out


def init_linear(key, in_features, out_features, dtype=jnp.float32):
    """Deterministic init matching torch.nn.Linear: U(-1/sqrt(in), 1/sqrt(in)) for W and b."""
    kw, kb = jax.random.split(key)
    bound = 1.0 / jnp.sqrt(jnp.asarray(in_features, dtype))
    # Stored as (in, out) so the kernel does x @ W (equivalent to torch's x @ W.T, W (out, in)).
    w = jax.random.uniform(kw, (in_features, out_features), dtype, -bound, bound)
    b = jax.random.uniform(kb, (1, out_features), dtype, -bound, bound)
    return w, b


def reference_forward_f32(x, params):
    """Pure f32 reference (exact semantics of the PyTorch module)."""
    (w1, b1), (w2, b2), (w3, b3) = params
    h1 = jnp.maximum(x @ w1 + b1, 0.0)
    h2 = jnp.maximum(h1 @ w2 + b2, 0.0)
    return h2 @ w3 + b3


def reference_forward_like_kernel(x, params, compute_dtype=jnp.bfloat16):
    """Reference that mirrors the kernel's mixed precision (bf16 operands, f32 accum)."""
    (w1, b1), (w2, b2), (w3, b3) = params
    xc = x.astype(compute_dtype)
    h1 = jnp.dot(xc, w1.astype(compute_dtype), preferred_element_type=jnp.float32) + b1
    h1 = jnp.maximum(h1, 0.0).astype(compute_dtype)
    h2 = jnp.dot(h1, w2.astype(compute_dtype), preferred_element_type=jnp.float32) + b2
    h2 = jnp.maximum(h2, 0.0).astype(compute_dtype)
    return jnp.dot(h2, w3.astype(compute_dtype), preferred_element_type=jnp.float32) + b3


if __name__ == "__main__":
    input_dim, hidden_layers, output_dim = 133, (150, 80), 28
    batch = 20  # non-multiple of the tile: exercises the 2-step grid + masked last block

    key = jax.random.PRNGKey(0)
    kx, k1, k2, k3 = jax.random.split(key, 4)

    x = jax.random.normal(kx, (batch, input_dim), jnp.float32)
    params = (
        init_linear(k1, input_dim, hidden_layers[0]),
        init_linear(k2, hidden_layers[0], hidden_layers[1]),
        init_linear(k3, hidden_layers[1], output_dim),
    )

    prepared = prepare_params(params)  # pad + cast weights once, outside the hot path
    fwd = jax.jit(lambda xb: fully_connected_forward(xb, prepared))

    out = jax.block_until_ready(fwd(x))
    assert out.shape == (batch, output_dim), out.shape

    # Tight check against a reference using the same mixed precision as the kernel.
    ref_mp = reference_forward_like_kernel(x, params)
    assert jnp.allclose(out, ref_mp, atol=1e-4, rtol=1e-3), \
        "Pallas output mismatch vs mixed-precision reference"

    # Loose sanity check against the exact f32 module semantics (bf16 rounding only).
    ref_f32 = reference_forward_f32(x, params)
    assert jnp.allclose(out, ref_f32, atol=5e-2, rtol=5e-2), \
        "Pallas output too far from f32 reference"

    print("KERNEL_OK")
</pallas_src>

<mosaic_0001>
module attributes {stable_mosaic.version = 11 : i64} {
  func.func @mlp_kernel(%arg0: i32, %arg1: memref<16x133xbf16, #tpu.memory_space<vmem>>, %arg2: memref<133x256xbf16, #tpu.memory_space<vmem>>, %arg3: memref<1x256xf32, #tpu.memory_space<vmem>>, %arg4: memref<256x128xbf16, #tpu.memory_space<vmem>>, %arg5: memref<1x128xf32, #tpu.memory_space<vmem>>, %arg6: memref<128x28xbf16, #tpu.memory_space<vmem>>, %arg7: memref<1x28xf32, #tpu.memory_space<vmem>>, %arg8: memref<16x28xf32, #tpu.memory_space<vmem>>) attributes {dimension_semantics = [#tpu.dimension_semantics<parallel>], iteration_bounds = array<i64: 2>, scalar_prefetch = 0 : i64, scratch_operands = 0 : i64, tpu.core_type = #tpu.core_type<tc>, window_params = [{transform_indices = @transform_0, window_bounds = array<i64: 16, 133>}, {pipeline_mode = #tpu.pipeline_mode<synchronous>, transform_indices = @transform_1, window_bounds = array<i64: 133, 256>}, {pipeline_mode = #tpu.pipeline_mode<synchronous>, transform_indices = @transform_2, window_bounds = array<i64: 1, 256>}, {pipeline_mode = #tpu.pipeline_mode<synchronous>, transform_indices = @transform_3, window_bounds = array<i64: 256, 128>}, {pipeline_mode = #tpu.pipeline_mode<synchronous>, transform_indices = @transform_4, window_bounds = array<i64: 1, 128>}, {pipeline_mode = #tpu.pipeline_mode<synchronous>, transform_indices = @transform_5, window_bounds = array<i64: 128, 28>}, {pipeline_mode = #tpu.pipeline_mode<synchronous>, transform_indices = @transform_6, window_bounds = array<i64: 1, 28>}, {transform_indices = @transform_7, window_bounds = array<i64: 16, 28>}]} {
    %c0 = arith.constant 0 : index
    %c0_0 = arith.constant 0 : index
    %0 = vector.load %arg1[%c0, %c0_0] : memref<16x133xbf16, #tpu.memory_space<vmem>>, vector<16x133xbf16>
    %c0_1 = arith.constant 0 : index
    %c0_2 = arith.constant 0 : index
    %1 = vector.load %arg2[%c0_1, %c0_2] : memref<133x256xbf16, #tpu.memory_space<vmem>>, vector<133x256xbf16>
    %cst = arith.constant dense<0.000000e+00> : vector<16x256xf32>
    %2 = tpu.matmul %0, %1, %cst {dimension_numbers = #tpu.dot_dimension_numbers<[1], [0], [0], [1], [0, 0, 1, 1], [], []>} : vector<16x133xbf16>, vector<133x256xbf16>, vector<16x256xf32> -> vector<16x256xf32>
    %c0_3 = arith.constant 0 : index
    %c0_4 = arith.constant 0 : index
    %3 = vector.load %arg3[%c0_3, %c0_4] : memref<1x256xf32, #tpu.memory_space<vmem>>, vector<1x256xf32>
    %4 = vector.broadcast %3 : vector<1x256xf32> to vector<16x256xf32>
    %5 = arith.addf %2, %4 : vector<16x256xf32>
    %cst_5 = arith.constant 0.000000e+00 : f32
    %6 = vector.broadcast %cst_5 : f32 to vector<16x256xf32>
    %7 = arith.maximumf %5, %6 : vector<16x256xf32>
    %8 = arith.truncf %7 : vector<16x256xf32> to vector<16x256xbf16>
    %c0_6 = arith.constant 0 : index
    %c0_7 = arith.constant 0 : index
    %9 = vector.load %arg4[%c0_6, %c0_7] : memref<256x128xbf16, #tpu.memory_space<vmem>>, vector<256x128xbf16>
    %cst_8 = arith.constant dense<0.000000e+00> : vector<16x128xf32>
    %10 = tpu.matmul %8, %9, %cst_8 {dimension_numbers = #tpu.dot_dimension_numbers<[1], [0], [0], [1], [0, 0, 1, 1], [], []>} : vector<16x256xbf16>, vector<256x128xbf16>, vector<16x128xf32> -> vector<16x128xf32>
    %c0_9 = arith.constant 0 : index
    %c0_10 = arith.constant 0 : index
    %11 = vector.load %arg5[%c0_9, %c0_10] : memref<1x128xf32, #tpu.memory_space<vmem>>, vector<1x128xf32>
    %12 = vector.broadcast %11 : vector<1x128xf32> to vector<16x128xf32>
    %13 = arith.addf %10, %12 : vector<16x128xf32>
    %cst_11 = arith.constant 0.000000e+00 : f32
    %14 = vector.broadcast %cst_11 : f32 to vector<16x128xf32>
    %15 = arith.maximumf %13, %14 : vector<16x128xf32>
    %16 = arith.truncf %15 : vector<16x128xf32> to vector<16x128xbf16>
    %c0_12 = arith.constant 0 : index
    %c0_13 = arith.constant 0 : index
    %17 = vector.load %arg6[%c0_12, %c0_13] : memref<128x28xbf16, #tpu.memory_space<vmem>>, vector<128x28xbf16>
    %cst_14 = arith.constant dense<0.000000e+00> : vector<16x28xf32>
    %18 = tpu.matmul %16, %17, %cst_14 {dimension_numbers = #tpu.dot_dimension_numbers<[1], [0], [0], [1], [0, 0, 1, 1], [], []>} : vector<16x128xbf16>, vector<128x28xbf16>, vector<16x28xf32> -> vector<16x28xf32>
    %c0_15 = arith.constant 0 : index
    %c0_16 = arith.constant 0 : index
    %19 = vector.load %arg7[%c0_15, %c0_16] : memref<1x28xf32, #tpu.memory_space<vmem>>, vector<1x28xf32>
    %20 = vector.broadcast %19 : vector<1x28xf32> to vector<16x28xf32>
    %21 = arith.addf %18, %20 : vector<16x28xf32>
    %c0_17 = arith.constant 0 : index
    %c0_18 = arith.constant 0 : index
    %22 = vector.load %arg8[%c0_17, %c0_18] : memref<16x28xf32, #tpu.memory_space<vmem>>, vector<16x28xf32>
    tpu.vector_store %arg8[%c0_17, %c0_18], %21 {strides = array<i32>} : memref<16x28xf32, #tpu.memory_space<vmem>>, vector<16x28xf32>,
    return
  }
  func.func @transform_0(%arg0: i32) -> (i32, i32) {
    %c0_i32 = arith.constant 0 : i32
    %c0_i32_0 = arith.constant 0 : i32
    return %arg0, %c0_i32 : i32, i32
  }
  func.func @transform_1(%arg0: i32) -> (i32, i32) {
    %c0_i32 = arith.constant 0 : i32
    %c0_i32_0 = arith.constant 0 : i32
    %c0_i32_1 = arith.constant 0 : i32
    return %c0_i32, %c0_i32_0 : i32, i32
  }
  func.func @transform_2(%arg0: i32) -> (i32, i32) {
    %c0_i32 = arith.constant 0 : i32
    %c0_i32_0 = arith.constant 0 : i32
    %c0_i32_1 = arith.constant 0 : i32
    return %c0_i32, %c0_i32_0 : i32, i32
  }
  func.func @transform_3(%arg0: i32) -> (i32, i32) {
    %c0_i32 = arith.constant 0 : i32
    %c0_i32_0 = arith.constant 0 : i32
    %c0_i32_1 = arith.constant 0 : i32
    return %c0_i32, %c0_i32_0 : i32, i32
  }
  func.func @transform_4(%arg0: i32) -> (i32, i32) {
    %c0_i32 = arith.constant 0 : i32
    %c0_i32_0 = arith.constant 0 : i32
    %c0_i32_1 = arith.constant 0 : i32
    return %c0_i32, %c0_i32_0 : i32, i32
  }
  func.func @transform_5(%arg0: i32) -> (i32, i32) {
    %c0_i32 = arith.constant 0 : i32
    %c0_i32_0 = arith.constant 0 : i32
    %c0_i32_1 = arith.constant 0 : i32
    return %c0_i32, %c0_i32_0 : i32, i32
  }
  func.func @transform_6(%arg0: i32) -> (i32, i32) {
    %c0_i32 = arith.constant 0 : i32
    %c0_i32_0 = arith.constant 0 : i32
    %c0_i32_1 = arith.constant 0 : i32
    return %c0_i32, %c0_i32_0 : i32, i32
  }
  func.func @transform_7(%arg0: i32) -> (i32, i32) {
    %c0_i32 = arith.constant 0 : i32
    %c0_i32_0 = arith.constant 0 : i32
    return %arg0, %c0_i32 : i32, i32
  }
}

</mosaic_0001>

<bundles_post_ra>
// kernel: _lambda_.1
= control target key start
LH: loop header
LB: loop body
LE: loop exit
PB: predicated region body
PF: predicated region fallthrough
CT: control target
= control target key end

     0   :  { %12 = vsyncpa [#allocation3], 0  ;;  %s1577_s0 = inlined_call_operand.vmem [shape: bf16[20,133], index: 0, kind: input, shape index: {}]   ;;  %s1578_s1 = inlined_call_operand.hbm [shape: bf16[133,256], index: 1, kind: input, shape index: {}]   ;;  %s1579_s2 = inlined_call_operand.vmem [shape: f32[1,256], index: 2, kind: input, shape index: {}]   ;;  %s1580_s3 = inlined_call_operand.hbm [shape: bf16[256,128], index: 3, kind: input, shape index: {}]   ;;  %s1581_s4 = inlined_call_operand.vmem [shape: f32[1,128], index: 4, kind: input, shape index: {}]   ;;  %s1582_s5 = inlined_call_operand.vmem [shape: bf16[128,28], index: 5, kind: input, shape index: {}]   ;;  %s1583_s6 = inlined_call_operand.vmem [shape: f32[1,28], index: 6, kind: input, shape index: {}]   ;;  %s1584_s7 = inlined_call_operand.hbm [shape: f32[20,28], index: 7, kind: output, shape index: {}]  }
   0x1   :  { %13 = vsyncpa [#allocation6], 0 }
   0x2   :  { %14 = vsyncpa [#allocation4], 0 }
   0x3   :  { %16 = vsyncpa [#allocation4 + $0x1], 0  ;;  %s1393_s24 = smov 0   ;;  %s1395_s25 = smov 0  }
   0x4   :  { %s1397_s26 = smov 0   ;;  %s1399_s27 = smov 0  }
   0x5 LB: > { %s1414_s28 = sadd.s32 4294967295, %s1341_s27   ;;  %s897_s29 = sadd.s32 4294967294, %s1341_s27   ;;  %s1341_s27 = sphi %s1399_s27, %s1594_s27   ;;  %s1337_s26 = sphi %s1397_s26, %s1593_s26   ;;  %s1333_s25 = sphi %s1395_s25, %s1592_s25   ;;  %s1329_s24 = sphi %s1393_s24, %s1591_s24  }
   0x6   : > { %s1418_s30 = sadd.s32 1, %s1341_s27   ;;  %s181_s8 = sadd.s32 1, %s1337_s26 }
   0x7   : > { %s178_s9 = ssub.s32 %s1341_s27, %s1418_s30  ;;  %p191_p0 = scmp.ne.s32.totalorder %s1337_s26, %s1333_s25 }
   0x8   : > { %p179_p1 = scmp.eq.s32.totalorder %s178_s9, 0  ;;  %p192_p2 = scmp.eq.s32.totalorder %s1414_s28, 1 }
   0x9   : > { %p197_p3 = scmp.ne.s32.totalorder %s1333_s25, %s1329_s24  ;;  %p198_p4 = scmp.eq.s32.totalorder %s897_s29, 1 }
   0xa   : > { %s1429_s10 = scalar_select %p179_p1, %s1337_s26, %s181_s8  }
   0xb   : > { %p1431_p5 = por %p192_p2, %p191_p0  ;;  %p1435_p6 = por %p198_p4, %p197_p3 }
   0xc   : > { %p898_p7 = scmp.ge.s32.totalorder %s1341_s27, 1  ;;  %p205_p8 = scmp.lt.s32.totalorder %s1341_s27, 3 }
   0xd   : > { %p1152_p9 = scmp.eq.s32.totalorder %s1414_s28, 0  ;;  %s216_s16 = sshll.u32 %s1578_s1, 4  ;;  %s217_s16 = int_to_ptr.hbm [resolvable:$true] %s216_s16 }
   0xe   : > { %p1442_p10 = pnand %p898_p7, %p205_p8  ;;  %s1343_s17 = smov [#allocation2]  }
   0xf   : > { %s218_s18 = sshll.u32 %s1343_s17, 4  ;;  %s233_s21 = sshll.u32 %s1580_s3, 4  ;;  %s219_s18 = int_to_ptr.vmem [resolvable:$true] %s218_s18  ;;  %s234_s21 = int_to_ptr.hbm [resolvable:$true] %s233_s21 }
  0x10   : > { %p1141_p11 = pneg %p1442_p10  ;;  %s1344_s22 = smov 128  }
  0x11   : > { %s1345_s23 = smov 8   ;;  %s1346_s29 = smov [#allocation5]  }
  0x12   : > { %p1142_p12 = pnand %p1152_p9, %p1141_p11  ;;  %s235_s8 = sshll.u32 %s1346_s29, 4  ;;  %s236_s8 = int_to_ptr.vmem [resolvable:$true] %s235_s8 }
  0x13   : > { %s1347_s9 = smov 64   ;;  %s1348_s14 = smov 4  }
  0x14   : > { %1144 = dma.hbm_to_vmem [thread:$0]  (!%p1142_p12), %s217_s16, 2176, %s219_s18, [#allocation3], %s1344_s22, %s1344_s22, %s1345_s23  }
  0x15   : > { %1147 = dma.hbm_to_vmem [thread:$0]  (!%p1142_p12), %s234_s21, 2048, %s236_s8, [#allocation6], %s1347_s9, %s1347_s9, %s1348_s14  }
  0x16   : > { %280 = sbr.rel (%p1442_p10) target bundleno = 529 (0x211), region = 48 }
  0x1b   : > { %1316 = dma.done.wait (%p1152_p9), [#allocation3], 2176  }
  0x1c   : > { %1318 = vsyncadd (%p1152_p9), [#allocation3], 4294965120 }
  0x1d   : > { %1320 = dma.done.wait (%p1152_p9), [#allocation6], 2048  }
  0x1e   : > { %1322 = vsyncadd (%p1152_p9), [#allocation6], 4294965248  ;;  %s1467_s15 = sshll.u32 %s1414_s28, 1  ;;  %v975_v0 = vld [vmem:[#allocation2 + $0x70] sm:$0xf]  ;;  %vm470_vm0 = vcmask 1041408  }
  0x1f   : > { %p330_p13 = scmp.lt.s32.totalorder %s1467_s15, 2  ;;  %v1106_v1 = vld [vmem:[#allocation2 + $0x74] sm:$0xf0]  ;;  %v1105_v2 = vld [vmem:[#allocation2 + $0x74] sm:$0xf]  ;;  %vm471_vm1 = vcmask 1042432  }
  0x20   : > { %v976_v3 = vor.u32 %v1106_v1, %v975_v0  ;;  %v977_v4 = vld [vmem:[#allocation2 + $0x78] sm:$0xf0]  ;;  %v967_v5 = vld [vmem:[#allocation2 + $0x60] sm:$0xf]  ;;  %v1104_v6 = vld [vmem:[#allocation2 + $0x64] sm:$0xf0] }
  0x21   : > { %s1471_s13 = scalar_select %p330_p13, %s1467_s15, 2  ;;  %v980_v7 = vor.u32 %v1105_v2, %v977_v4  ;;  %v1103_v8 = vld [vmem:[#allocation2 + $0x64] sm:$0xf]  ;;  %v969_v9 = vld [vmem:[#allocation2 + $0x68] sm:$0xf0]  ;;  %v968_v10 = vor.u32 %v1104_v6, %v967_v5  ;;  %v1349_v17 = vmov 65535  }
  0x22   : > { %480 = vmatpush.bf16.msra.mxu0 %v976_v3  ;;  %v972_v11 = vor.u32 %v1103_v8, %v969_v9  ;;  %v959_v12 = vld [vmem:[#allocation2 + $0x50] sm:$0xf]  ;;  %v1102_v13 = vld [vmem:[#allocation2 + $0x54] sm:$0xf0]  ;;  %v1101_v14 = vld [vmem:[#allocation2 + $0x54] sm:$0xf] }
  0x23   : > { %508 = vmatpush.bf16.msra.mxu2 %v980_v7  ;;  %v961_v15 = vld [vmem:[#allocation2 + $0x58] sm:$0xf0]  ;;  %s1088_s16 = sshll.u32 %s1471_s13, 3  ;;  %v960_v16 = vor.u32 %v1102_v13, %v959_v12  ;;  %v472_v18 = vsel %vm470_vm0, 4294967295, %v1349_v17  ;;  %v951_v20 = vld [vmem:[#allocation2 + $0x40] sm:$0xf] }
  0x24   : > { %v964_v19 = vor.u32 %v1101_v14, %v961_v15  ;;  %v1100_v21 = vld [vmem:[#allocation2 + $0x44] sm:$0xf0]  ;;  %v365_v22 = vld [vmem:[#allocation2 + $0x80] sm:$0x77]  ;;  %s1477_s19 = scalar_lea.vmem %s1577_s0, %s1088_s16  ;;  %v953_v24 = vld [vmem:[#allocation2 + $0x48] sm:$0xf0] }
  0x25   : > { %v1099_v23 = vld [vmem:[#allocation2 + $0x44] sm:$0xf]  ;;  %v431_v25 = vunpack.c.h.b16 %v365_v22  ;;  %v430_v26 = vunpack.c.l.b16 %v365_v22  ;;  %v473_v27 = vsel %vm471_vm1, %v472_v18, 0  ;;  %v952_v28 = vor.u32 %v1100_v21, %v951_v20  ;;  %v913_v31 = vld [vmem:[%s1477_s19 + $0x8] sm:$0xf0]  ;;  %v1113_v49 = vld [vmem:[#allocation5 + $0x30] sm:$0xff] }
  0x26   : > { %481 = vmatpush.bf16.msra.mxu0 %v968_v10  ;;  %v1089_v30 = vld [vmem:[%s1477_s19 + $0x4] sm:$0xf]  ;;  %v956_v33 = vor.u32 %v1099_v23, %v953_v24  ;;  %v943_v34 = vld [vmem:[#allocation2 + $0x30] sm:$0xf]  ;;  %v1098_v35 = vld [vmem:[#allocation2 + $0x34] sm:$0xf0] }
  0x27   : > { %509 = vmatpush.bf16.msra.mxu2 %v972_v11  ;;  %v449_v29 = vpack.c.b16 %v431_v25, %v431_v25  ;;  %v448_v32 = vpack.c.b16 %v430_v26, %v430_v26  ;;  %v1097_v36 = vld [vmem:[#allocation2 + $0x34] sm:$0xf]  ;;  %v945_v37 = vld [vmem:[#allocation2 + $0x38] sm:$0xf0]  ;;  %v1114_v40 = vld [vmem:[#allocation5 + $0x38] sm:$0xff]  ;;  %v916_v42 = vor.u32 %v1089_v30, %v913_v31  ;;  %v944_v43 = vor.u32 %v1098_v35, %v943_v34  ;;  %s321_s14 = sand.u32 1, %s1333_s25  }
  0x28   : > { %v1122_v41 = vld [vmem:[#allocation5 + $0x78] sm:$0xff]  ;;  %vm466_vm2 = vcmask 39936   ;;  %v948_v44 = vor.u32 %v1097_v36, %v945_v37  ;;  %v1096_v46 = vld [vmem:[#allocation2 + $0x24] sm:$0xf0]  ;;  %v937_v48 = vld [vmem:[#allocation2 + $0x28] sm:$0xf0] }
  0x29   : > { %v478_v38 = vand.u32 %v473_v27, %v449_v29  ;;  %v475_v39 = vand.u32 %v473_v27, %v448_v32  ;;  %v935_v45 = vld [vmem:[#allocation2 + $0x20] sm:$0xf]  ;;  %v1095_v47 = vld [vmem:[#allocation2 + $0x24] sm:$0xf]  ;;  %v1121_v50 = vld [vmem:[#allocation5 + $0x70] sm:$0xff]  ;;  %s905_s13 = sshll.u32 %s321_s14, 4 }
  0x2a   : > { %482 = vmatpush.bf16.msra.mxu0 %v960_v16  ;;  %v936_v51 = vor.u32 %v1096_v46, %v935_v45  ;;  %v940_v52 = vor.u32 %v1095_v47, %v937_v48  ;;  %v927_v53 = vld [vmem:[#allocation2 + $0x10] sm:$0xf]  ;;  %v1094_v54 = vld [vmem:[#allocation2 + $0x14] sm:$0xf0]  ;;  %v1093_v55 = vld [vmem:[#allocation2 + $0x14] sm:$0xf] }
  0x2b   : > { %510 = vmatpush.bf16.msra.mxu2 %v964_v19  ;;  %529 = vmatpush.bf16.msra.mxu3 %v478_v38  ;;  %v929_v56 = vld [vmem:[#allocation2 + $0x18] sm:$0xf0]  ;;  %v1112_v57 = vld [vmem:[#allocation5 + $0x28] sm:$0xff]  ;;  %v928_v58 = vor.u32 %v1094_v54, %v927_v53  ;;  %v919_v60 = vld [vmem:[#allocation2] sm:$0xf]  ;;  %vm787_vm3 = vcmask 228352  }
  0x2c   : > { %501 = vmatpush.bf16.msra.mxu1 %v475_v39  ;;  %v932_v59 = vor.u32 %v1093_v55, %v929_v56  ;;  %v1092_v61 = vld [vmem:[#allocation2 + $0x4] sm:$0xf0]  ;;  %v1091_v62 = vld [vmem:[#allocation2 + $0x4] sm:$0xf]  ;;  %v921_v63 = vld [vmem:[#allocation2 + $0x8] sm:$0xf0] }
  0x2d   : > { %v1111_v0 = vld [vmem:[#allocation5 + $0x20] sm:$0xff]  ;;  %v920_v1 = vor.u32 %v1092_v61, %v919_v60  ;;  %v911_v2 = vld [vmem:[%s1477_s19] sm:$0xf]  ;;  %v924_v4 = vor.u32 %v1091_v62, %v921_v63  ;;  %v1120_v6 = vld [vmem:[#allocation5 + $0x68] sm:$0xff]  ;;  %s323_s18 = scalar_lea.vmem [#allocation7], %s905_s13  ;;  %s799_s20 = ssub.s32 (%p1431_p5), 3, %s1467_s15 }
  0x2e   : > { %483 = vmatpush.bf16.msra.mxu0 %v952_v28  ;;  %982 = vmatmul.msk.bf16.vlgmr.msra.gmra.mxu3 %vm466_vm2, %v916_v42  ;;  %v1090_v3 = vld [vmem:[%s1477_s19 + $0x4] sm:$0xf0]  ;;  %v1110_v7 = vld [vmem:[#allocation5 + $0x18] sm:$0xff]  ;;  %v1109_v9 = vld [vmem:[#allocation5 + $0x10] sm:$0xff]  ;;  %s1517_s19 = scalar_lea.sflag [#allocation4], %s321_s14  ;;  %p800_p0 = scmp.lt.s32.totalorder (%p1431_p5), %s799_s20, 2 }
  0x2f   : > { %511 = vmatpush.bf16.msra.mxu2 %v956_v33  ;;  %688 = vmatpush.bf16.msrb.mxu3 %v1122_v41  ;;  %v912_v5 = vor.u32 %v1090_v3, %v911_v2  ;;  %v1119_v8 = vld [vmem:[#allocation5 + $0x60] sm:$0xff]  ;;  %v1118_v10 = vld [vmem:[#allocation5 + $0x58] sm:$0xff]  ;;  %v1108_v11 = vld [vmem:[#allocation5 + $0x8] sm:$0xff] }
  0x30   : > { %674 = vmatpush.bf16.msrb.mxu1 %v1114_v40  ;;  %v1117_v12 = vld [vmem:[#allocation5 + $0x50] sm:$0xff]  ;;  %v1107_v13 = vld [vmem:[#allocation5] sm:$0xff]  ;;  %v1116_v14 = vld [vmem:[#allocation5 + $0x48] sm:$0xff] }
  0x31   : > { %981 = vmatmul.msk.bf16.vlgmr.msra.gmra.mxu1 %vm466_vm2, %v916_v42  ;;  %v1115_v15 = vld [vmem:[#allocation5 + $0x40] sm:$0xff]  ;;  %v1130_v16 = vld [vmem:[%s1582_s5 + $0x38] sm:$0xff]  ;;  %v366_v17 = vld [vmem:[%s1579_s2] sm:$0x3] }
  0x32   : > { %484 = vmatpush.bf16.msra.mxu0 %v944_v43  ;;  %v368_v19 = vperm.slane %v366_v17, 0  ;;  %v369_v25 = vperm.slane %v366_v17, 1  ;;  %v1129_v42 = vld [vmem:[%s1582_s5 + $0x30] sm:$0xff]  ;;  %v1128_v43 = vld [vmem:[%s1582_s5 + $0x28] sm:$0xff]  ;;  %v1126_v45 = vld [vmem:[%s1582_s5 + $0x18] sm:$0xff] }
  0x33   : > { %512 = vmatpush.bf16.msra.mxu2 %v948_v44  ;;  %689 = vmatpush.bf16.msrb.mxu3 %v1121_v50  ;;  %v1127_v44 = vld [vmem:[%s1582_s5 + $0x20] sm:$0xff]  ;;  %v1125_v46 = vld [vmem:[%s1582_s5 + $0x10] sm:$0xff]  ;;  %v1124_v47 = vld [vmem:[%s1582_s5 + $0x8] sm:$0xff] }
  0x34   : > { %675 = vmatpush.bf16.msrb.mxu1 %v1113_v49  ;;  %v1123_v48 = vld [vmem:[%s1582_s5] sm:$0xff] }
  0x35   : > { %v1199_v61 = vld [vmem:[%s1583_s6] ss:$0 sm:$0xff] }
  0x36   : > { %485 = vmatpush.bf16.msra.mxu0 %v936_v51  ;;  %v1198_v51 = vld [vmem:[%s1581_s4] ss:$0 sm:$0xff] }
  0x37   : > { %513 = vmatpush.bf16.msra.mxu2 %v940_v52  ;;  %690 = vmatpush.bf16.msrb.mxu3 %v1120_v6 }
  0x38   : > { %676 = vmatpush.bf16.msrb.mxu1 %v1112_v57 }
  0x3a   : > { %486 = vmatpush.bf16.msra.mxu0 %v928_v58 }
  0x3b   : > { %514 = vmatpush.bf16.msra.mxu2 %v932_v59  ;;  %691 = vmatpush.bf16.msrb.mxu3 %v1119_v8 }
  0x3c   : > { %677 = vmatpush.bf16.msrb.mxu1 %v1111_v0 }
  0x3e   : > { %487 = vmatpush.bf16.msra.mxu0 %v920_v1 }
  0x3f   : > { %515 = vmatpush.bf16.msra.mxu2 %v924_v4  ;;  %692 = vmatpush.bf16.msrb.mxu3 %v1118_v10 }
  0x40   : > { %678 = vmatpush.bf16.msrb.mxu1 %v1110_v7 }
  0x41   : > { %488 = vmatmul.bf16.vlgmr.msra.gmra.mxu0 %v912_v5 }
  0x42   : > { %516 = vmatmul.bf16.vlgmr.msra.gmra.mxu2 %v912_v5  ;;  %773 = vmatpush.bf16.msrb.mxu0 %v1130_v16 }
  0x43   : > { %693 = vmatpush.bf16.msrb.mxu3 %v1117_v12 }
  0x44   : > { %679 = vmatpush.bf16.msrb.mxu1 %v1109_v9 }
  0x46   : > { %774 = vmatpush.bf16.msrb.mxu0 %v1129_v42 }
  0x47   : > { %694 = vmatpush.bf16.msrb.mxu3 %v1116_v14 }
  0x48   : > { %680 = vmatpush.bf16.msrb.mxu1 %v1108_v11 }
  0x4a   : > { %775 = vmatpush.bf16.msrb.mxu0 %v1128_v43 }
  0x4b   : > { %695 = vmatpush.bf16.msrb.mxu3 %v1115_v15 }
  0x4c   : > { %681 = vmatpush.bf16.msrb.mxu1 %v1107_v13 }
  0x4e   : > { %776 = vmatpush.bf16.msrb.mxu0 %v1127_v44 }
  0x52   : > { %777 = vmatpush.bf16.msrb.mxu0 %v1126_v45 }
  0x56   : > { %778 = vmatpush.bf16.msrb.mxu0 %v1125_v46 }
  0x5a   : > { %779 = vmatpush.bf16.msrb.mxu0 %v1124_v47 }
  0x5e   : > { %780 = vmatpush.bf16.msrb.mxu0 %v1123_v48 }
  0xae   : > { %v503_v18 = vpop.f32.mrf.mxu1 }
  0xb1   : > { %v531_v22 = vpop.f32.mrf.mxu3 }
  0xb6   : > { %v505_v27 = vpop.f32.mrf.mxu1 }
  0xb9   : > { %v533_v37 = vpop.f32.mrf.mxu3 }
  0xbe   : > { %v489_v20 = vpop.f32.mrf.mxu0 }
  0xbf   : > { %v490_v21 = vadd.f32 %v489_v20, %v368_v19 }
  0xc1   : > { %v504_v23 = vadd.f32 %v503_v18, %v490_v21 }
  0xc3   : > { %v536_v29 = vmax.f32 %v504_v23, 0.0 }
  0xc5   : > { %v517_v24 = vpop.f32.mrf.mxu2 }
  0xc6   : > { %v491_v26 = vpop.f32.mrf.mxu0  ;;  %v518_v31 = vadd.f32 %v517_v24, %v369_v25 }
  0xc7   : > { %v492_v28 = vadd.f32 %v491_v26, %v368_v19 }
  0xc8   : > { %v532_v35 = vadd.f32 %v531_v22, %v518_v31 }
  0xc9   : > { %v506_v30 = vadd.f32 %v505_v27, %v492_v28 }
  0xca   : > { %v537_v39 = vmax.f32 %v532_v35, 0.0 }
  0xcb   : > { %v538_v32 = vmax.f32 %v506_v30, 0.0 }
  0xcd   : > { %v540_v33 = vpack.c.bf16 %v538_v32, %v536_v29  ;;  %v519_v34 = vpop.f32.mrf.mxu2 }
  0xce   : > { %v520_v36 = vadd.f32 %v519_v34, %v369_v25 }
  0xcf   : > { %682 = vmatmul.bf16.vlgmr.msrb.gmra.mxu1 %v540_v33 }
  0xd0   : > { %v534_v38 = vadd.f32 %v533_v37, %v520_v36 }
  0xd2   : > { %v539_v40 = vmax.f32 %v534_v38, 0.0 }
  0xd4   : > { %v541_v41 = vpack.c.bf16 %v539_v40, %v537_v39 }
  0xd6   : > { %696 = vmatmul.bf16.vlgmr.msrb.gmra.mxu3 %v541_v41 }
 0x14c   : > { %v683_v49 = vpop.f32.mrf.mxu1 }
 0x14d   : > { %v684_v53 = vadd.f32 %v1198_v51, %v683_v49 }
 0x154   : > { %v685_v52 = vpop.f32.mrf.mxu1 }
 0x155   : > { %v686_v54 = vadd.f32 %v1198_v51, %v685_v52 }
 0x159   : > { %v697_v50 = vpop.f32.mrf.mxu3 }
 0x15a   : > { %v698_v55 = vadd.f32 %v697_v50, %v684_v53 }
 0x15c   : > { %v702_v58 = vmax.f32 %v698_v55, 0.0 }
 0x161   : > { %v699_v56 = vpop.f32.mrf.mxu3 }
 0x162   : > { %v700_v57 = vadd.f32 %v699_v56, %v686_v54 }
 0x164   : > { %v703_v59 = vmax.f32 %v700_v57, 0.0 }
 0x166   : > { %v704_v60 = vpack.c.bf16 %v703_v59, %v702_v58 }
 0x168   : > { %781 = vmatmul.bf16.vlgmr.msrb.gmra.mxu0 %v704_v60 }
 0x1e5   : > { %v782_v62 = vpop.f32.mrf.mxu0 }
 0x1e6   : > { %v783_v63 = vadd.f32 %v1199_v61, %v782_v62 }
 0x1e8   : > { %788 = vst.msk [vmem:[%s323_s18] sm:$0xff] %vm787_vm3, %v783_v63 }
 0x1ec   : > { %797 = sbr.rel (!%p1431_p5) target bundleno = 529 (0x211), region = 60 }
 0x1ed   : > { %v784_v0 = vpop.f32.mrf.mxu0 }
 0x1ee   : > { %v785_v1 = vadd.f32 %v1199_v61, %v784_v0 }
 0x1f0   : > { %789 = vst.msk [vmem:[%s323_s18 + $0x8] sm:$0xff] %vm787_vm3, %v785_v1 }
 0x1f1   : > { %s1596_s20 = smov (!%p800_p0, %s799_s20), 2 }
 0x1f2   : > { %s1081_s21 = sshll.u32 %s1596_s20, 3 }
 0x1f3   : > { %s803_s22 = ssub.s32 16, %s1081_s21 }
 0x1f4   : > { %s804_s23 = sshll.u32 %s803_s22, 4 }
 0x1f5   : > { %805 = vsyncadd %s1517_s19, %s804_s23  ;;  %p1526_p1 = scmp.ne.s32.totalorder %s1081_s21, 0  ;;  %s1131_s11 = sshll.u32 %s1414_s28, 4 }
 0x1f6   : > { %s808_s15 = scalar_lea.hbm %s1584_s7, %s1131_s11  ;;  %s810_s14 = sshll.u32 %s323_s18, 4  ;;  %s1534_s14 = int_to_ptr.vmem [resolvable:$true] %s810_s14 }
 0x1f7   : > { %s812_s13 = sshll.u32 %s808_s15, 4  ;;  %s1585_s16 = sshll.u32 %s1596_s20, 7  ;;  %s1536_s13 = int_to_ptr.hbm [resolvable:$true] %s812_s13 }
 0x1f8   : > { %s1260_s17 = sshra.s32 %s1534_s14, 4  ;;  %s1262_s21 = sshrl.u32 %s1585_s16, 4  ;;  %s1261_s17 = int_to_ptr.vmem [resolvable:$true] %s1260_s17 }
 0x1f9   : > { %s1267_s22 = scalar_lea.vmem %s1261_s17, %s1262_s21  ;;  %s1350_s28 = smov [#allocation7]  }
 0x1fa   : > { %p1268_p2 = scmp.ne.s32.totalorder %s1261_s17, %s1267_s22  ;;  %s1271_s23 = scalar_lea.vmem %s1350_s28, 32 }
 0x1fb   : > { %p1273_p5 = scmp.lt.s32.totalorder %s1271_s23, %s1267_s22 }
 0x1fc   : > { %p1269_p3 = pnand %p1268_p2, %p1526_p1 }
 0x1fe   : > { %p1270_p4 = pneg %p1269_p3 }
 0x200   : > { %p1275_p7 = pnand %p1273_p5, %p1270_p4 }
 0x202   : > { %1278 = shalt.err (!%p1275_p7)
}
 0x203   : > { %s1279_s18 = sshra.s32 %s1536_s13, 4  ;;  %s1290_s15 = scalar_lea.hbm %s1584_s7, 24  ;;  %s1280_s18 = int_to_ptr.hbm [resolvable:$true] %s1279_s18 }
 0x204   : > { %s1286_s11 = scalar_lea.hbm %s1280_s18, %s1262_s21  ;;  %p1291_p11 = scmp.lt.s32.totalorder %s1280_s18, %s1584_s7 }
 0x205   : > { %p1287_p8 = scmp.ne.s32.totalorder %s1280_s18, %s1286_s11  ;;  %p1292_p12 = scmp.lt.s32.totalorder %s1290_s15, %s1286_s11 }
 0x207   : > { %p1288_p9 = pnand %p1287_p8, %p1526_p1  ;;  %p1293_p13 = por %p1292_p12, %p1291_p11 }
 0x209   : > { %p1289_p10 = pneg %p1288_p9 }
 0x20b   : > { %p1294_p0 = pnand %p1293_p13, %p1289_p10 }
 0x20d   : > { %1297 = shalt.err (!%p1294_p0)
}
 0x20e   : > { %s1351_s22 = smov 128   ;;  %s1352_s21 = smov 8  }
 0x20f   : > { %s1590_s28 = sshll.u32 %s1596_s20, 7 }
 0x210   : > { %818 = dma.vmem_to_hbm [thread:$0]  (%p1526_p1), %s1534_s14, %s1590_s28, %s1536_s13, %s1517_s19, %s1351_s22, %s1351_s22, %s1352_s21  }
 0x211 PF: > { %p1156_p2 = scmp.ge.s32.totalorder %s1341_s27, 2  ;;  %s827_s16 = sand.u32 1, %s1329_s24  }
 0x212   : > { %s828_s23 = scalar_lea.sflag [#allocation4], %s827_s16 }
 0x213   : > { %p1149_p3 = pnand %p1156_p2, %p1435_p6 }
 0x215   : > { %p1150_p4 = pneg %p1149_p3 }
 0x217   : > { %1324 = dma.done.wait (%p1150_p4), %s828_s23, 256  }
 0x218   : > { %1326 = vsyncadd (%p1150_p4), %s828_s23, 4294967040  ;;  %p19_p5 = scmp.ge.s32.totalorder %s1418_s30, 4   ;;  %s1591_s24 = smov %s1333_s25 }
 0x219   : > { %s1592_s25 = smov %s1337_s26  ;;  %s1593_s26 = smov %s1429_s10 }
 0x21a   : > { %s1594_s27 = smov %s1418_s30  ;;  %21 = sbr.rel (!%p19_p5) target bundleno = 5 (0x5), region = 92 }
 0x21f   :  { %834 = vsyncpa [#allocation3], 1 }
 0x220   :  { %836 = vsyncpa [#allocation3 + $0x1], 1 }
 0x221   :  { %837 = vsyncpa [#allocation6], 1 }
 0x222   :  { %838 = vsyncpa [#allocation4], 1 }
 0x223   :  { %840 = vsyncpa [#allocation4 + $0x1], 1 }

</bundles_post_ra>
